<compile_context>
chip_gen: v7x
topology: tpu7x:2x2x1
jax: 0.10.0
libtpu: 0.0.40
codegen_flags: <defaults>
</compile_context>

<pallas_src>
import functools

import jax
import jax.numpy as jnp
from jax import lax
from jax.experimental import pallas as pl
from jax.experimental.pallas import tpu as pltpu

_LANE = 128
_MAX_LANE_CHUNKS = 64  # cap on unrolled 128-lane chunk ops per tile (fallback path)


def _round_up(x, m):
    return ((x + m - 1) // m) * m


def _vmem_capacity_bytes():
    """Physical VMEM per core, with a conservative fallback (v7x = 64 MiB)."""
    try:
        info = pltpu.get_tpu_info()
        for name in ("vmem_capacity_bytes", "vmem_bytes", "vmem_size_bytes"):
            cap = getattr(info, name, None)
            if cap:
                return int(cap)
    except Exception:
        pass
    return 64 << 20


def _choose_hw_tile(hw_pad, rows, itemsize, target_bytes, max_lane_chunks=None):
    """Largest multiple-of-128 divisor of hw_pad (itself a multiple of 128)
    whose (rows, tile) block fits the byte target (and, optionally, whose
    128-lane chunk count stays within the unroll cap)."""
    max_lanes = max(target_bytes // max(rows * itemsize, 1), _LANE)
    if max_lane_chunks is not None:
        max_lanes = min(max_lanes, max_lane_chunks * _LANE)
    best = _LANE
    for t in range(_LANE, hw_pad + 1, _LANE):
        if hw_pad % t == 0 and t <= max_lanes:
            best = t
    return best


def _vmem_limit(need_bytes, clamp):
    return int(min(max(need_bytes + (2 << 20), 16 << 20), clamp))


def _pack_branch_weight(w1, w3, w5):
    """Fused branch weight (3*mid, 5*C): maps 5 tap-shifted copies of avg
    (tap k holds avg[:, d + k - 2]) onto the concatenated [y1; y3; y5] rows.
    conv1 uses tap 2, conv3 taps 1..3, conv5 taps 0..4; unused slots are 0."""
    mid, C = w1.shape
    wb = jnp.zeros((3 * mid, 5 * C), jnp.float32)
    wb = wb.at[0:mid, 2 * C:3 * C].set(w1.astype(jnp.float32))
    for k in range(3):
        wb = wb.at[mid:2 * mid, (k + 1) * C:(k + 2) * C].set(w3[k].astype(jnp.float32))
    for k in range(5):
        wb = wb.at[2 * mid:3 * mid, k * C:(k + 1) * C].set(w5[k].astype(jnp.float32))
    return wb


# ---------------------------------------------------------------------------
# Fused single-pass kernel: stream x into a resident slab, reduce + attend on
# the last HW tile, gate the resident copy into the (aliased) output slab.
# ---------------------------------------------------------------------------
def _fused_kernel(x_ref, wb_ref, wf_ref, o_ref, xslab_ref, *, inv_hw, hw_tile, n_hw):
    t = pl.program_id(1)

    # Streaming step: pure VMEM copy of this lane-dense tile into the resident
    # per-batch slab; no per-tile reduction, so each step stays DMA-bound.
    xslab_ref[t] = x_ref[...]

    @pl.when(t == n_hw - 1)
    def _epilogue():
        C, D, _ = o_ref.shape

        # Spatial mean: the cross-lane (XLU) reduce happens once per batch,
        # off the streaming loop (overlaps with the next batch's input DMAs).
        s = jnp.zeros((C, D), jnp.float32)
        for j in range(n_hw):
            s = s + jnp.sum(xslab_ref[j].astype(jnp.float32), axis=-1)
        avg = s * inv_hw                                          # (C, D), D on lanes

        # The 5 tap shifts along D via XLU roll + edge masks (no lane concat /
        # unaligned lane slices of a padded buffer).
        d_idx = lax.broadcasted_iota(jnp.int32, (C, D), 1)
        taps = []
        for k in range(5):
            off = k - 2
            shifted = avg if off == 0 else pltpu.roll(avg, (-off) % D, 1)
            valid = (d_idx + off >= 0) & (d_idx + off < D)
            taps.append(jnp.where(valid, shifted, 0.0))
        taps = jnp.concatenate(taps, axis=0)                      # (5*C, D)

        # conv1/conv3/conv5 fused into one matmul (wb is zero in unused tap
        # slots), then ReLU, then the fused fc matmul, then sigmoid.
        y = jnp.dot(wb_ref[...], taps, preferred_element_type=jnp.float32)
        z = jnp.dot(wf_ref[...], jnp.maximum(y, 0.0),
                    preferred_element_type=jnp.float32)           # (C, D)
        attn = jax.nn.sigmoid(z).astype(o_ref.dtype)

        # One lane->sublane relayout + lane broadcast per batch; the gating
        # itself is pure VALU in the input dtype.
        ab = jnp.broadcast_to(attn[:, :, None], (C, D, hw_tile))
        for j in range(n_hw):
            o_ref[:, :, j * hw_tile:(j + 1) * hw_tile] = xslab_ref[j] * ab


# ---------------------------------------------------------------------------
# Streaming fallback, pass 1: spatial mean with a per-lane partial accumulator
# (pure VALU adds per tile; single cross-lane reduce per batch).
# ---------------------------------------------------------------------------
def _mean_kernel(x_ref, mean_ref, acc_ref, *, inv_hw, n_chunks):
    t = pl.program_id(1)

    @pl.when(t == 0)
    def _():
        acc_ref[...] = jnp.zeros_like(acc_ref)

    acc = acc_ref[...]
    for j in range(n_chunks):  # vreg-aligned 128-lane chunks, VALU only
        acc = acc + x_ref[:, :, j * _LANE:(j + 1) * _LANE].astype(jnp.float32)
    acc_ref[...] = acc

    @pl.when(t == pl.num_programs(1) - 1)
    def _():
        mean_ref[...] = jnp.sum(acc_ref[...], axis=-1) * inv_hw


# ---------------------------------------------------------------------------
# Streaming fallback, pass 2: gate x by attn pre-broadcast to the x-tile
# layout (D on sublanes, 128 dense lanes) -> no per-tile relayout.
# ---------------------------------------------------------------------------
def _apply_kernel(x_ref, a_ref, o_ref, *, n_chunks):
    a = a_ref[...]                                                # (C, D, 128)
    for j in range(n_chunks):
        sl = slice(j * _LANE, (j + 1) * _LANE)
        o_ref[:, :, sl] = x_ref[:, :, sl] * a


def _attention_weights(mean, wb, wf):
    """mean: (B, C, D) f32 -> sigmoid(fc(relu(cat(conv1, conv3, conv5)))).
    Batched over B in plain XLA so the tiny matmuls fill the MXU and stay off
    the streaming kernels' critical path."""
    B, C, D = mean.shape
    pad = jnp.pad(mean, ((0, 0), (0, 0), (2, 2)))
    taps = jnp.concatenate([pad[:, :, k:k + D] for k in range(5)], axis=1)  # (B,5C,D)
    y = jnp.einsum("of,bfd->bod", wb, taps)
    z = jnp.einsum("cf,bfd->bcd", wf, jax.nn.relu(y))
    return jax.nn.sigmoid(z)


def multi_scale_spectral_attention(x, w1, w3, w5, wf, *, max_fused_slab_bytes=None):
    """x: (B, C, D, H, W).  w1: (mid, C).  w3: (3, mid, C).  w5: (5, mid, C).
    wf: (C, 3*mid).  All convs in the PyTorch module are bias=False."""
    B, C, D, H, W = x.shape
    mid = w1.shape[0]
    HW = H * W
    HW_pad = _round_up(HW, _LANE)
    itemsize = jnp.dtype(x.dtype).itemsize

    # Lane-dense spatial axis, zero-padded to a multiple of 128 lanes (the
    # padded lanes do not change the spatial sum and are dropped at the end).
    xr = x.reshape(B, C, D, HW)
    if HW_pad != HW:
        xr = jnp.pad(xr, ((0, 0), (0, 0), (0, 0), (0, HW_pad - HW)))

    wb = _pack_branch_weight(w1, w3, w5)           # (3*mid, 5*C) f32
    wf32 = wf.astype(jnp.float32)                  # (C, 3*mid)  f32
    w_bytes = (wb.size + wf32.size) * 4

    vmem_cap = _vmem_capacity_bytes()
    vmem_clamp = max(vmem_cap - (8 << 20), 32 << 20)   # headroom for compiler scratch

    slab_bytes = C * D * HW_pad * itemsize
    if max_fused_slab_bytes is None:
        # Fused footprint ~= resident slab + 2x output slab + input tiles +
        # tile-sized epilogue temporaries; keep slab <= ~1/4 of usable VMEM.
        max_fused_slab_bytes = max((vmem_clamp - w_bytes) // 4, 0)

    if slab_bytes <= max_fused_slab_bytes:
        # ------------- Fused single pass: 1x HBM read + 1x HBM write --------
        hw_tile = _choose_hw_tile(HW_pad, C * D, itemsize,
                                  max(vmem_cap // 32, 1 << 20))
        n_hw = HW_pad // hw_tile
        tile_bytes = C * D * hw_tile * itemsize
        vmem_need = (2 * tile_bytes            # double-buffered input tiles
                     + slab_bytes              # resident x slab (scratch)
                     + 2 * slab_bytes          # double-buffered output slab
                     + w_bytes
                     + 2 * C * D * hw_tile * 4)  # epilogue f32 temporaries
        out = pl.pallas_call(
            functools.partial(_fused_kernel, inv_hw=1.0 / HW,
                              hw_tile=hw_tile, n_hw=n_hw),
            out_shape=jax.ShapeDtypeStruct((B, C, D, HW_pad), x.dtype),
            grid=(B, n_hw),
            in_specs=[
                pl.BlockSpec((pl.Squeezed(), C, D, hw_tile),
                             lambda b, t: (b, 0, 0, t)),
                pl.BlockSpec((3 * mid, 5 * C), lambda b, t: (0, 0)),
                pl.BlockSpec((C, 3 * mid), lambda b, t: (0, 0)),
            ],
            out_specs=pl.BlockSpec((pl.Squeezed(), C, D, HW_pad),
                                   lambda b, t: (b, 0, 0, 0)),
            scratch_shapes=[pltpu.VMEM((n_hw, C, D, hw_tile), x.dtype)],
            input_output_aliases={0: 0},
            compiler_params=pltpu.CompilerParams(
                dimension_semantics=("parallel", "arbitrary"),
                vmem_limit_bytes=_vmem_limit(vmem_need, vmem_clamp)),
        )(xr, wb, wf32)
    else:
        # ------------- Streaming fallback (slab does not fit VMEM) ----------
        hw_tile = _choose_hw_tile(HW_pad, C * D, itemsize,
                                  max(vmem_cap // 6, 1 << 20),
                                  max_lane_chunks=_MAX_LANE_CHUNKS)
        n_hw = HW_pad // hw_tile
        n_chunks = hw_tile // _LANE
        tile_bytes = C * D * hw_tile * itemsize
        x_block = (pl.Squeezed(), C, D, hw_tile)

        # Pass 1: spatial mean only (attention math happens batched in XLA).
        mean_need = 2 * tile_bytes + 2 * C * D * (_LANE + 1) * 4 + tile_bytes
        mean = pl.pallas_call(
            functools.partial(_mean_kernel, inv_hw=1.0 / HW, n_chunks=n_chunks),
            out_shape=jax.ShapeDtypeStruct((B, C, D), jnp.float32),
            grid=(B, n_hw),
            in_specs=[pl.BlockSpec(x_block, lambda b, t: (b, 0, 0, t))],
            out_specs=pl.BlockSpec((pl.Squeezed(), C, D), lambda b, t: (b, 0, 0)),
            scratch_shapes=[pltpu.VMEM((C, D, _LANE), jnp.float32)],
            compiler_params=pltpu.CompilerParams(
                dimension_semantics=("parallel", "arbitrary"),
                vmem_limit_bytes=_vmem_limit(mean_need, vmem_clamp)),
        )(xr)

        attn = _attention_weights(mean, wb, wf32)                 # (B, C, D) f32
        # Pre-broadcast once per batch to the x-tile layout (D on sublanes,
        # 128 dense lanes) and cast once to the gating dtype.
        attn_b = jnp.broadcast_to(attn.astype(x.dtype)[:, :, :, None],
                                  (B, C, D, _LANE))

        apply_need = 4 * tile_bytes + 2 * C * D * _LANE * itemsize
        out = pl.pallas_call(
            functools.partial(_apply_kernel, n_chunks=n_chunks),
            out_shape=jax.ShapeDtypeStruct((B, C, D, HW_pad), x.dtype),
            grid=(B, n_hw),
            in_specs=[
                pl.BlockSpec(x_block, lambda b, t: (b, 0, 0, t)),
                pl.BlockSpec((pl.Squeezed(), C, D, _LANE),
                             lambda b, t: (b, 0, 0, 0)),
            ],
            out_specs=pl.BlockSpec(x_block, lambda b, t: (b, 0, 0, t)),
            input_output_aliases={0: 0},
            compiler_params=pltpu.CompilerParams(
                dimension_semantics=("parallel", "parallel"),
                vmem_limit_bytes=_vmem_limit(apply_need, vmem_clamp)),
        )(xr, attn_b)

    if HW_pad != HW:
        out = out[:, :, :, :HW]
    return out.reshape(B, C, D, H, W)


if __name__ == "__main__":
    B, C, D, H, W = 2, 4, 8, 16, 16
    reduction_ratio = 2
    mid = C // reduction_ratio

    key = jax.random.PRNGKey(0)
    kx, k1, k3, k5, kf = jax.random.split(key, 5)
    x = jax.random.normal(kx, (B, C, D, H, W), jnp.float32)

    # Deterministic synthetic weights in PyTorch Conv3d layout (O, I, kD, kH, kW).
    w1_t = jax.random.normal(k1, (mid, C, 1, 1, 1), jnp.float32) * 0.2
    w3_t = jax.random.normal(k3, (mid, C, 3, 3, 3), jnp.float32) * 0.2
    w5_t = jax.random.normal(k5, (mid, C, 5, 5, 5), jnp.float32) * 0.2
    wf_t = jax.random.normal(kf, (C, 3 * mid, 1, 1, 1), jnp.float32) * 0.2

    # Only the center kH/kW taps contribute (pooled input has H=W=1 + zero pad):
    w1 = w1_t[:, :, 0, 0, 0]                                  # (mid, C)
    w3 = jnp.transpose(w3_t[:, :, :, 1, 1], (2, 0, 1))        # (3, mid, C)
    w5 = jnp.transpose(w5_t[:, :, :, 2, 2], (2, 0, 1))        # (5, mid, C)
    wf = wf_t[:, :, 0, 0, 0]                                  # (C, 3*mid)

    # Pure-JAX reference of the PyTorch forward (computed before the kernel
    # calls, since pass 2 / the fused pass alias their output onto the input).
    def reference(x):
        avg = x.mean(axis=(3, 4))                             # (B, C, D)
        y1 = jnp.einsum('oc,bcd->bod', w1, avg)
        pad = jnp.pad(avg, ((0, 0), (0, 0), (2, 2)))
        y3 = sum(jnp.einsum('oc,bcd->bod', w3[k], pad[:, :, 1 + k:1 + k + D])
                 for k in range(3))
        y5 = sum(jnp.einsum('oc,bcd->bod', w5[k], pad[:, :, k:k + D])
                 for k in range(5))
        y = jnp.concatenate([jax.nn.relu(y1), jax.nn.relu(y3), jax.nn.relu(y5)],
                            axis=1)                            # (B, 3*mid, D)
        z = jnp.einsum('cf,bfd->bcd', wf, y)
        return jax.nn.sigmoid(z)[:, :, :, None, None] * x

    ref = jax.block_until_ready(reference(x))

    # Fused single-pass path (small per-batch slab fits VMEM).
    out = jax.block_until_ready(multi_scale_spectral_attention(x, w1, w3, w5, wf))
    assert out.shape == x.shape and out.dtype == x.dtype
    assert jnp.allclose(out, ref, atol=1e-4, rtol=1e-4), "fused path mismatch"

    # Exercise the streaming fallback path too (forced by a zero fuse budget).
    out2 = jax.block_until_ready(
        multi_scale_spectral_attention(x, w1, w3, w5, wf, max_fused_slab_bytes=0))
    assert jnp.allclose(out2, ref, atol=1e-4, rtol=1e-4), "streaming path mismatch"

    print("KERNEL_OK")
</pallas_src>

<mosaic_0001>
module attributes {stable_mosaic.version = 11 : i64} {
  func.func @_fused_kernel(%arg0: i32, %arg1: i32, %arg2: memref<1x4x8x256xf32, #tpu.memory_space<vmem>>, %arg3: memref<6x20xf32, #tpu.memory_space<vmem>>, %arg4: memref<4x6xf32, #tpu.memory_space<vmem>>, %arg5: memref<1x4x8x256xf32, #tpu.memory_space<vmem>>, %arg6: memref<1x4x8x256xf32, #tpu.memory_space<vmem>>) attributes {dimension_semantics = [#tpu.dimension_semantics<parallel>, #tpu.dimension_semantics<arbitrary>], iteration_bounds = array<i64: 2, 1>, scalar_prefetch = 0 : i64, scratch_operands = 1 : i64, tpu.core_type = #tpu.core_type<tc>, window_params = [{transform_indices = @transform_0, window_bounds = array<i64: 1, 4, 8, 256>}, {pipeline_mode = #tpu.pipeline_mode<synchronous>, transform_indices = @transform_1, window_bounds = array<i64: 6, 20>}, {pipeline_mode = #tpu.pipeline_mode<synchronous>, transform_indices = @transform_2, window_bounds = array<i64: 4, 6>}, {transform_indices = @transform_3, window_bounds = array<i64: 1, 4, 8, 256>}]} {
    %c0 = arith.constant 0 : index
    %c0_0 = arith.constant 0 : index
    %c0_1 = arith.constant 0 : index
    %c0_2 = arith.constant 0 : index
    %0 = vector.load %arg2[%c0, %c0_0, %c0_1, %c0_2] : memref<1x4x8x256xf32, #tpu.memory_space<vmem>>, vector<1x4x8x256xf32>
    %1 = vector.shape_cast %0 : vector<1x4x8x256xf32> to vector<4x8x256xf32>
    %2 = arith.index_cast %arg1 : i32 to index
    %c0_3 = arith.constant 0 : index
    %c0_4 = arith.constant 0 : index
    %c0_5 = arith.constant 0 : index
    %3 = vector.load %arg6[%2, %c0_3, %c0_4, %c0_5] : memref<1x4x8x256xf32, #tpu.memory_space<vmem>>, vector<1x4x8x256xf32>
    %4 = vector.shape_cast %3 : vector<1x4x8x256xf32> to vector<4x8x256xf32>
    %5 = vector.shape_cast %1 : vector<4x8x256xf32> to vector<1x4x8x256xf32>
    tpu.vector_store %arg6[%2, %c0_3, %c0_4, %c0_5], %5 {strides = array<i32>} : memref<1x4x8x256xf32, #tpu.memory_space<vmem>>, vector<1x4x8x256xf32>,
    %c0_i32 = arith.constant 0 : i32
    %6 = arith.cmpi eq, %arg1, %c0_i32 : i32
    %7 = arith.extui %6 : i1 to i32
    %c0_i32_6 = arith.constant 0 : i32
    %8 = arith.cmpi ne, %7, %c0_i32_6 : i32
    scf.if %8 {
      %cst = arith.constant 0.000000e+00 : f32
      %9 = vector.broadcast %cst : f32 to vector<4x8xf32>
      %c0_7 = arith.constant 0 : index
      %c0_8 = arith.constant 0 : index
      %c0_9 = arith.constant 0 : index
      %c0_10 = arith.constant 0 : index
      %10 = vector.load %arg6[%c0_7, %c0_8, %c0_9, %c0_10] : memref<1x4x8x256xf32, #tpu.memory_space<vmem>>, vector<1x4x8x256xf32>
      %11 = vector.shape_cast %10 : vector<1x4x8x256xf32> to vector<4x8x256xf32>
      %cst_11 = arith.constant dense<0.000000e+00> : vector<4x8xf32>
      %12 = vector.multi_reduction <add>, %11, %cst_11 [2] : vector<4x8x256xf32> to vector<4x8xf32>
      %13 = arith.addf %9, %12 : vector<4x8xf32>
      %cst_12 = arith.constant 3.906250e-03 : f32
      %14 = vector.broadcast %cst_12 : f32 to vector<4x8xf32>
      %15 = arith.mulf %13, %14 : vector<4x8xf32>
      %16 = tpu.iota {dimensions = array<i32: 1>} : vector<4x8xi32>
      %c2_i32 = arith.constant 2 : i32
      %17 = tpu.dynamic_rotate %15 by %c2_i32 dim 1 : vector<4x8xf32>, i32 -> vector<4x8xf32>
      %c-2_i32 = arith.constant -2 : i32
      %18 = vector.broadcast %c-2_i32 : i32 to vector<4x8xi32>
      %19 = arith.addi %16, %18 : vector<4x8xi32>
      %c0_i32_13 = arith.constant 0 : i32
      %20 = vector.broadcast %c0_i32_13 : i32 to vector<4x8xi32>
      %21 = arith.cmpi sge, %19, %20 : vector<4x8xi32>
      %c-2_i32_14 = arith.constant -2 : i32
      %22 = vector.broadcast %c-2_i32_14 : i32 to vector<4x8xi32>
      %23 = arith.addi %16, %22 : vector<4x8xi32>
      %c8_i32 = arith.constant 8 : i32
      %24 = vector.broadcast %c8_i32 : i32 to vector<4x8xi32>
      %25 = arith.cmpi slt, %23, %24 : vector<4x8xi32>
      %26 = arith.andi %21, %25 : vector<4x8xi1>
      %cst_15 = arith.constant 0.000000e+00 : f32
      %27 = vector.broadcast %cst_15 : f32 to vector<4x8xf32>
      %28 = arith.select %26, %17, %27 : vector<4x8xi1>, vector<4x8xf32>
      %c1_i32 = arith.constant 1 : i32
      %29 = tpu.dynamic_rotate %15 by %c1_i32 dim 1 : vector<4x8xf32>, i32 -> vector<4x8xf32>
      %c-1_i32 = arith.constant -1 : i32
      %30 = vector.broadcast %c-1_i32 : i32 to vector<4x8xi32>
      %31 = arith.addi %16, %30 : vector<4x8xi32>
      %c0_i32_16 = arith.constant 0 : i32
      %32 = vector.broadcast %c0_i32_16 : i32 to vector<4x8xi32>
      %33 = arith.cmpi sge, %31, %32 : vector<4x8xi32>
      %c-1_i32_17 = arith.constant -1 : i32
      %34 = vector.broadcast %c-1_i32_17 : i32 to vector<4x8xi32>
      %35 = arith.addi %16, %34 : vector<4x8xi32>
      %c8_i32_18 = arith.constant 8 : i32
      %36 = vector.broadcast %c8_i32_18 : i32 to vector<4x8xi32>
      %37 = arith.cmpi slt, %35, %36 : vector<4x8xi32>
      %38 = arith.andi %33, %37 : vector<4x8xi1>
      %cst_19 = arith.constant 0.000000e+00 : f32
      %39 = vector.broadcast %cst_19 : f32 to vector<4x8xf32>
      %40 = arith.select %38, %29, %39 : vector<4x8xi1>, vector<4x8xf32>
      %c0_i32_20 = arith.constant 0 : i32
      %41 = vector.broadcast %c0_i32_20 : i32 to vector<4x8xi32>
      %42 = arith.addi %16, %41 : vector<4x8xi32>
      %c0_i32_21 = arith.constant 0 : i32
      %43 = vector.broadcast %c0_i32_21 : i32 to vector<4x8xi32>
      %44 = arith.cmpi sge, %42, %43 : vector<4x8xi32>
      %c0_i32_22 = arith.constant 0 : i32
      %45 = vector.broadcast %c0_i32_22 : i32 to vector<4x8xi32>
      %46 = arith.addi %16, %45 : vector<4x8xi32>
      %c8_i32_23 = arith.constant 8 : i32
      %47 = vector.broadcast %c8_i32_23 : i32 to vector<4x8xi32>
      %48 = arith.cmpi slt, %46, %47 : vector<4x8xi32>
      %49 = arith.andi %44, %48 : vector<4x8xi1>
      %cst_24 = arith.constant 0.000000e+00 : f32
      %50 = vector.broadcast %cst_24 : f32 to vector<4x8xf32>
      %51 = arith.select %49, %15, %50 : vector<4x8xi1>, vector<4x8xf32>
      %c7_i32 = arith.constant 7 : i32
      %52 = tpu.dynamic_rotate %15 by %c7_i32 dim 1 : vector<4x8xf32>, i32 -> vector<4x8xf32>
      %c1_i32_25 = arith.constant 1 : i32
      %53 = vector.broadcast %c1_i32_25 : i32 to vector<4x8xi32>
      %54 = arith.addi %16, %53 : vector<4x8xi32>
      %c0_i32_26 = arith.constant 0 : i32
      %55 = vector.broadcast %c0_i32_26 : i32 to vector<4x8xi32>
      %56 = arith.cmpi sge, %54, %55 : vector<4x8xi32>
      %c1_i32_27 = arith.constant 1 : i32
      %57 = vector.broadcast %c1_i32_27 : i32 to vector<4x8xi32>
      %58 = arith.addi %16, %57 : vector<4x8xi32>
      %c8_i32_28 = arith.constant 8 : i32
      %59 = vector.broadcast %c8_i32_28 : i32 to vector<4x8xi32>
      %60 = arith.cmpi slt, %58, %59 : vector<4x8xi32>
      %61 = arith.andi %56, %60 : vector<4x8xi1>
      %cst_29 = arith.constant 0.000000e+00 : f32
      %62 = vector.broadcast %cst_29 : f32 to vector<4x8xf32>
      %63 = arith.select %61, %52, %62 : vector<4x8xi1>, vector<4x8xf32>
      %c6_i32 = arith.constant 6 : i32
      %64 = tpu.dynamic_rotate %15 by %c6_i32 dim 1 : vector<4x8xf32>, i32 -> vector<4x8xf32>
      %c2_i32_30 = arith.constant 2 : i32
      %65 = vector.broadcast %c2_i32_30 : i32 to vector<4x8xi32>
      %66 = arith.addi %16, %65 : vector<4x8xi32>
      %c0_i32_31 = arith.constant 0 : i32
      %67 = vector.broadcast %c0_i32_31 : i32 to vector<4x8xi32>
      %68 = arith.cmpi sge, %66, %67 : vector<4x8xi32>
      %c2_i32_32 = arith.constant 2 : i32
      %69 = vector.broadcast %c2_i32_32 : i32 to vector<4x8xi32>
      %70 = arith.addi %16, %69 : vector<4x8xi32>
      %c8_i32_33 = arith.constant 8 : i32
      %71 = vector.broadcast %c8_i32_33 : i32 to vector<4x8xi32>
      %72 = arith.cmpi slt, %70, %71 : vector<4x8xi32>
      %73 = arith.andi %68, %72 : vector<4x8xi1>
      %cst_34 = arith.constant 0.000000e+00 : f32
      %74 = vector.broadcast %cst_34 : f32 to vector<4x8xf32>
      %75 = arith.select %73, %64, %74 : vector<4x8xi1>, vector<4x8xf32>
      %76 = tpu.concatenate %28, %40, %51, %63, %75 in 0 : vector<4x8xf32>, vector<4x8xf32>, vector<4x8xf32>, vector<4x8xf32>, vector<4x8xf32> -> vector<20x8xf32>
      %c0_35 = arith.constant 0 : index
      %c0_36 = arith.constant 0 : index
      %77 = vector.load %arg3[%c0_35, %c0_36] : memref<6x20xf32, #tpu.memory_space<vmem>>, vector<6x20xf32>
      %cst_37 = arith.constant dense<0.000000e+00> : vector<6x8xf32>
      %78 = tpu.matmul %77, %76, %cst_37 {dimension_numbers = #tpu.dot_dimension_numbers<[1], [0], [0], [1], [0, 0, 1, 1], [], []>} : vector<6x20xf32>, vector<20x8xf32>, vector<6x8xf32> -> vector<6x8xf32>
      %c0_38 = arith.constant 0 : index
      %c0_39 = arith.constant 0 : index
      %79 = vector.load %arg4[%c0_38, %c0_39] : memref<4x6xf32, #tpu.memory_space<vmem>>, vector<4x6xf32>
      %cst_40 = arith.constant 0.000000e+00 : f32
      %80 = vector.broadcast %cst_40 : f32 to vector<6x8xf32>
      %81 = arith.maximumf %78, %80 : vector<6x8xf32>
      %cst_41 = arith.constant dense<0.000000e+00> : vector<4x8xf32>
      %82 = tpu.matmul %79, %81, %cst_41 {dimension_numbers = #tpu.dot_dimension_numbers<[1], [0], [0], [1], [0, 0, 1, 1], [], []>} : vector<4x6xf32>, vector<6x8xf32>, vector<4x8xf32> -> vector<4x8xf32>
      %83 = arith.negf %82 : vector<4x8xf32>
      %84 = math.exp %83 : vector<4x8xf32>
      %cst_42 = arith.constant 1.000000e+00 : f32
      %85 = vector.broadcast %cst_42 : f32 to vector<4x8xf32>
      %86 = arith.addf %85, %84 : vector<4x8xf32>
      %87 = arith.divf %85, %86 : vector<4x8xf32>
      %88 = vector.shape_cast %87 : vector<4x8xf32> to vector<4x8x1xf32>
      %89 = vector.shape_cast %88 : vector<4x8x1xf32> to vector<4x8x1xf32>
      %90 = vector.broadcast %89 : vector<4x8x1xf32> to vector<4x8x256xf32>
      %c0_43 = arith.constant 0 : index
      %c0_44 = arith.constant 0 : index
      %c0_45 = arith.constant 0 : index
      %c0_46 = arith.constant 0 : index
      %91 = vector.load %arg6[%c0_43, %c0_44, %c0_45, %c0_46] : memref<1x4x8x256xf32, #tpu.memory_space<vmem>>, vector<1x4x8x256xf32>
      %92 = vector.shape_cast %91 : vector<1x4x8x256xf32> to vector<4x8x256xf32>
      %93 = arith.mulf %92, %90 : vector<4x8x256xf32>
      %c0_47 = arith.constant 0 : index
      %c0_48 = arith.constant 0 : index
      %c0_49 = arith.constant 0 : index
      %c0_50 = arith.constant 0 : index
      %94 = vector.load %arg5[%c0_47, %c0_48, %c0_49, %c0_50] : memref<1x4x8x256xf32, #tpu.memory_space<vmem>>, vector<1x4x8x256xf32>
      %95 = vector.shape_cast %94 : vector<1x4x8x256xf32> to vector<4x8x256xf32>
      %96 = vector.shape_cast %93 : vector<4x8x256xf32> to vector<1x4x8x256xf32>
      tpu.vector_store %arg5[%c0_47, %c0_48, %c0_49, %c0_50], %96 {strides = array<i32>} : memref<1x4x8x256xf32, #tpu.memory_space<vmem>>, vector<1x4x8x256xf32>,
    } else {
    }
    return
  }
  func.func @transform_0(%arg0: i32, %arg1: i32) -> (i32, i32, i32, i32) {
    %c0_i32 = arith.constant 0 : i32
    %c0_i32_0 = arith.constant 0 : i32
    %c0_i32_1 = arith.constant 0 : i32
    return %arg0, %c0_i32, %c0_i32_0, %arg1 : i32, i32, i32, i32
  }
  func.func @transform_1(%arg0: i32, %arg1: i32) -> (i32, i32) {
    %c0_i32 = arith.constant 0 : i32
    %c0_i32_0 = arith.constant 0 : i32
    %c0_i32_1 = arith.constant 0 : i32
    return %c0_i32, %c0_i32_0 : i32, i32
  }
  func.func @transform_2(%arg0: i32, %arg1: i32) -> (i32, i32) {
    %c0_i32 = arith.constant 0 : i32
    %c0_i32_0 = arith.constant 0 : i32
    %c0_i32_1 = arith.constant 0 : i32
    return %c0_i32, %c0_i32_0 : i32, i32
  }
  func.func @transform_3(%arg0: i32, %arg1: i32) -> (i32, i32, i32, i32) {
    %c0_i32 = arith.constant 0 : i32
    %c0_i32_0 = arith.constant 0 : i32
    %c0_i32_1 = arith.constant 0 : i32
    %c0_i32_2 = arith.constant 0 : i32
    return %arg0, %c0_i32, %c0_i32_0, %c0_i32_1 : i32, i32, i32, i32
  }
}

</mosaic_0001>

<bundles_post_ra>
// kernel: tpu_custom_call.1
= control target key start
LH: loop header
LB: loop body
LE: loop exit
PB: predicated region body
PF: predicated region fallthrough
CT: control target
= control target key end

     0   :  { %8 = vsyncpa [#allocation4], 0  ;;  %s1150_s0 = inlined_call_operand.hbm [shape: f32[2,4,8,256], index: 0, kind: input, shape index: {}, may-alias: {0,3}]   ;;  %s1151_s1 = inlined_call_operand.vmem [shape: f32[6,20], index: 1, kind: input, shape index: {}]   ;;  %s1152_s2 = inlined_call_operand.vmem [shape: f32[4,6], index: 2, kind: input, shape index: {}]   ;;  %s1153_s3 = inlined_call_operand.hbm [shape: f32[2,4,8,256], index: 3, kind: output, shape index: {}, may-alias: {0,3}]  }
   0x1   :  { %10 = vsyncpa [#allocation4 + $0x1], 0 }
   0x2   :  { %11 = vsyncpa [#allocation5], 0 }
   0x3   :  { %13 = vsyncpa [#allocation5 + $0x1], 0  ;;  %s918_s12 = smov 0   ;;  %s920_s13 = smov 0  }
   0x4   :  { %s922_s14 = smov 0   ;;  %s924_s15 = smov 0  }
   0x5   :  { %s926_s16 = smov 0   ;;  %s928_s17 = smov 0  }
   0x6 LB: > { %s647_s18 = sadd.s32 4294967295, %s882_s17   ;;  %s648_s19 = sadd.s32 4294967294, %s882_s17   ;;  %s882_s17 = sphi %s928_s17, %s19_s17   ;;  %s878_s16 = sphi %s926_s16, %s1168_s16   ;;  %s874_s15 = sphi %s924_s15, %s1167_s15   ;;  %s870_s14 = sphi %s922_s14, %s1166_s14   ;;  %s866_s13 = sphi %s920_s13, %s1165_s13   ;;  %s862_s12 = sphi %s918_s12, %s1164_s12  }
   0x7   : > { %s31_s20 = sadd.s32 1, %s878_s16  ;;  %s40_s21 = sadd.s32 1, %s870_s14 }
   0x8   : > { %p33_p0 = scmp.ge.s32.totalorder %s31_s20, 2  ;;  %p47_p1 = scmp.ne.s32.totalorder %s870_s14, %s866_s13 }
   0x9   : > { %p48_p2 = scmp.eq.s32.totalorder %s882_s17, 0  ;;  %p53_p3 = scmp.ne.s32.totalorder %s866_s13, %s862_s12 }
   0xa   : > { %s1170_s20 = smov (%p33_p0, %s31_s20), 0  ;;  %p54_p5 = scmp.eq.s32.totalorder %s647_s18, 0 }
   0xb   : > { %p959_p4 = por %p48_p2, %p47_p1  ;;  %s35_s23 = ssub.s32 %s878_s16, %s1170_s20 }
   0xc   : > { %p119_p6 = scmp.eq.s32.totalorder %s647_s18, 1  ;;  %p38_p7 = scmp.eq.s32.totalorder %s35_s23, 0 }
   0xd   : > { %p965_p8 = por %p54_p5, %p53_p3  ;;  %p125_p10 = scmp.eq.s32.totalorder %s648_s19, 1 }
   0xe   : > { %p969_p9 = por %p119_p6, %p47_p1  ;;  %p704_p13 = scmp.lt.s32.totalorder %s882_s17, 2 }
   0xf   : > { %s974_s26 = scalar_select %p38_p7, %s870_s14, %s40_s21  }
  0x10   : > { %s1157_s25 = scalar_select %p969_p9, 1, 0 }
  0x11   : > { %p976_p11 = por %p125_p10, %p53_p3  ;;  %s151_s28 = sand.u32 1, %s870_s14  }
  0x12   : > { %s651_s29 = sshll.u32 %s151_s28, 6  ;;  %s667_s30 = sshll.u32 %s878_s16, 10 }
  0x13   : > { %s1158_s27 = scalar_select %p976_p11, 1, 0 }
  0x14   : > { %s987_s6 = scalar_lea.hbm %s1150_s0, %s667_s30  ;;  %s155_s7 = scalar_lea.vmem [#allocation3], %s651_s29 }
  0x15   : > { %s164_s8 = sshll.u32 %s155_s7, 4  ;;  %p993_p0 = pnand %p704_p13, %p959_p4  ;;  %s989_s8 = int_to_ptr.vmem [resolvable:$true] %s164_s8 }
  0x16   : > { %s998_s10 = scalar_lea.sflag [#allocation4], %s151_s28  ;;  %s770_s11 = scalar_lea.hbm %s987_s6, 1024 }
  0x17   : > { %p771_p2 = scmp.ne.s32.totalorder %s987_s6, %s770_s11  ;;  %p772_p3 = pneg %p993_p0 }
  0x18   : > { %s775_s21 = scalar_lea.hbm %s1150_s0, 2048  ;;  %p776_p4 = scmp.lt.u32.totalorder %s987_s6, %s1150_s0 }
  0x19   : > { %p773_p5 = pnand %p772_p3, %p771_p2  ;;  %p777_p7 = scmp.lt.u32.totalorder %s775_s21, %s770_s11 }
  0x1a   : > { %p779_p13 = scmp.lt.u32.totalorder %s770_s11, %s987_s6 }
  0x1b   : > { %p774_p6 = pneg %p773_p5  ;;  %p778_p10 = por %p777_p7, %p776_p4 }
  0x1d   : > { %p780_p12 = por %p779_p13, %p778_p10 }
  0x1f   : > { %p781_p1 = pnand %p780_p12, %p774_p6 }
  0x21   : > { %784 = shalt.err (!%p781_p1)
}
  0x22   : > { %s785_s28 = scalar_lea.vmem %s989_s8, 1024  ;;  %s884_s29 = smov [#allocation3]  }
  0x23   : > { %p786_p2 = scmp.ne.s32.totalorder %s989_s8, %s785_s28  ;;  %s790_s30 = sshll.u32 %s884_s29, 4  ;;  %s791_s30 = int_to_ptr.vmem [resolvable:$false] %s790_s30 }
  0x24   : > { %s792_s4 = scalar_lea.vmem %s791_s30, 2048  ;;  %p793_p9 = scmp.lt.s32.totalorder %s989_s8, %s791_s30 }
  0x25   : > { %p788_p5 = pnand %p786_p2, %p772_p3  ;;  %p794_p4 = scmp.lt.s32.totalorder %s792_s4, %s785_s28 }
  0x27   : > { %p789_p11 = pneg %p788_p5  ;;  %p795_p7 = por %p794_p4, %p793_p9 }
  0x29   : > { %p796_p10 = pnand %p795_p7, %p789_p11 }
  0x2b   : > { %799 = shalt.err (!%p796_p10)
}
  0x2c   : > { %s885_s5 = smov 256   ;;  %s886_s7 = smov 16  }
  0x2d   : > { %699 = dma.hbm_to_vmem [thread:$0]  (!%p993_p0), %s987_s6, 1024, %s989_s8, %s998_s10, %s885_s5, %s885_s5, %s886_s7  }
  0x2e   : > { %p172_p12 = scmp.lt.s32.totalorder %s882_s17, 3  ;;  %p1160_p1 = scmp.ge.s32.totalorder %s882_s17, 1 }
  0x30   : > { %p173_p3 = pnand %p1160_p1, %p172_p12 }
  0x31   : > { %s1030_s11 = sand.u32 (!%p173_p3), 1, %s866_s13  }
  0x32   : > { %176 = sbr.rel (%p173_p3) target bundleno = 1168 (0x490), region = 32  ;;  %s655_s18 = sshll.u32 (!%p173_p3), %s1030_s11, 6 }
  0x33   : > { %s179_s19 = scalar_lea.sflag (!%p173_p3), [#allocation4], %s1030_s11  ;;  %s182_s21 = scalar_lea.vmem (!%p173_p3), [#allocation3], %s655_s18 }
  0x39   : > { %853 = dma.done.wait (%p965_p8), %s179_s19, 1024  }
  0x3a   : > { %855 = vsyncadd (%p965_p8), %s179_s19, 4294966272  ;;  %v1040_v0 = vld [vmem:[%s182_s21] sm:$0xff]  ;;  %v1042_v1 = vld [vmem:[%s182_s21 + $0x8] sm:$0xff]  ;;  %v257_v12 = vlaneseq  ;;  %vm279_vm0 = vcmask 1041409   ;;  %vm281_vm1 = vcmask 1042434   ;;  %vm283_vm2 = vcmask 1043459  }
  0x3b   : > { %v1044_v2 = vld [vmem:[%s182_s21 + $0x20] sm:$0xff]  ;;  %v237_v3 = vadd.f32 %v1042_v1, %v1040_v0  ;;  %v1048_v4 = vld [vmem:[%s182_s21 + $0x28] sm:$0xff]  ;;  %v1050_v5 = vld [vmem:[%s182_s21 + $0x10] sm:$0xff]  ;;  %s887_s24 = smov 8   ;;  %vm286_vm3 = vcmask 1047616   ;;  %v888_v33 = vmov 0.0|0.0  }
  0x3c   : > { %v1052_v6 = vld [vmem:[%s182_s21 + $0x18] sm:$0xff]  ;;  %v243_v7 = vadd.f32 %v1048_v4, %v1044_v2  ;;  %v1056_v8 = vld [vmem:[%s182_s21 + $0x30] sm:$0xff]  ;;  %v1064_v13 = vand.u32 127, %v257_v12  ;;  %v1066_v14 = vshrl.u32 %v257_v12, 7  ;;  %689 = vmatprep.subr.bf16.mxu0 %v888_v33  ;;  %v889_v35 = vmov 0.0   ;;  %s890_s6 = smov 122  }
  0x3d   : > { %v1058_v9 = vld [vmem:[%s182_s21 + $0x38] sm:$0xff]  ;;  %238 = vadd.xlane.f32.xlu0 %v237_v3  ;;  %v240_v10 = vadd.f32 %v1052_v6, %v1050_v5  ;;  %684 = vmatprep.subr.mxu1 %v889_v35  ;;  %s891_s8 = smov 121   ;;  %vm892_vm4 = vmmov 0   ;;  %s893_s9 = smov 127   ;;  %vm336_vm13 = vcmask 1043456   ;;  %vm340_vm15 = vcmask 162816  }
  0x3e   : > { %244 = vadd.xlane.f32.xlu1 %v243_v7  ;;  %v246_v11 = vadd.f32 %v1058_v9, %v1056_v8  ;;  %v265_v17 = vsub.s32 %v1064_v13, %v1066_v14  ;;  %681 = vmatprep.mubr.msk.f32.mxu0 %vm892_vm4, %v889_v35  ;;  %s894_s10 = smov 126   ;;  %v302_v37 = vadd.s32 4294967295, %v1064_v13  ;;  %v293_v38 = vadd.s32 4294967294, %v1064_v13  ;;  %v339_v54 = vld [vmem:[%s1151_s1] sm:$0x3f]  ;;  %s204_s30 = scalar_lea.vmem [#allocation6], %s655_s18 }
  0x3f   : > { %686 = vmatprep.mubr.msk.f32.mxu1 %vm892_vm4, %v889_v35  ;;  %v314_v39 = vadd.s32 1, %v1064_v13  ;;  %vm311_vm12 = vcmp.lt.s32.totalorder %v1064_v13, 8  ;;  %v322_v48 = vadd.s32 2, %v1064_v13  ;;  %v417_v59 = vld [vmem:[%s1152_s2] sm:$0xf]  ;;  %v512_v7 = vsub.s32 1, %v1066_v14 }
  0x40   : > { %vm303_vm5 = vcmp.ge.s32.totalorder %v302_v37, 0  ;;  %vm304_vm6 = vcmp.lt.s32.totalorder %v302_v37, 8  ;;  %vm294_vm8 = vcmp.ge.s32.totalorder %v293_v38, 0  ;;  %vm295_vm9 = vcmp.lt.s32.totalorder %v293_v38, 8  ;;  %s561_s4 = sshll.u32 %s204_s30, 4  ;;  %s668_s5 = sshll.u32 %s874_s15, 10  ;;  %s1092_s4 = int_to_ptr.vmem [resolvable:$true] %s561_s4 }
  0x41   : > { %241 = vadd.xlane.f32.xlu0 %v240_v10  ;;  %vm305_vm7 = vmand %vm303_vm5, %vm304_vm6  ;;  %vm316_vm10 = vcmp.lt.s32.totalorder %v314_v39, 8  ;;  %vm324_vm14 = vcmp.lt.s32.totalorder %v322_v48, 8  ;;  %v505_v10 = vsub.s32 0, %v1066_v14  ;;  %s1097_s19 = scalar_lea.hbm %s1153_s3, %s668_s5  ;;  %s548_s15 = scalar_lea.sflag [#allocation5], %s1030_s11 }
  0x42   : > { %247 = vadd.xlane.f32.xlu1 %v246_v11  ;;  %vm296_vm11 = vmand %vm294_vm8, %vm295_vm9  ;;  %s800_s21 = scalar_lea.vmem %s1092_s4, 1024  ;;  %p1161_p9 = scmp.ne.s32.totalorder %s1157_s25, 0 }
  0x43   : > { %p801_p8 = scmp.ne.s32.totalorder %s1092_s4, %s800_s21 }
  0x45   : > { %p802_p11 = pnand %p801_p8, %p1161_p9 }
  0x47   : > { %p803_p0 = pneg %p802_p11 }
  0xca   : > { %v239_v15 = vpop.xlane.xlu0 %238 }
  0xcb   : > { %v245_v16 = vpop.xlane.xlu1 %244  ;;  %v253_v18 = vmul.f32 0.00390625, %v239_v15  ;;  %v526_v15 = vsub.s32 3, %v1066_v14 }
  0xcc   : > { %v255_v19 = vmul.f32 0.00390625, %v245_v16  ;;  %v519_v16 = vsub.s32 2, %v1066_v14 }
  0xcd   : > { %v266_v24 = vrot.slane %v253_v18, %v265_v17 }
  0xce   : > { %v242_v20 = vpop.xlane.xlu0 %241  ;;  %v274_v26 = vrot.slane %v255_v19, %v265_v17 }
  0xcf   : > { %v254_v21 = vmul.f32 0.00390625, %v242_v20  ;;  %v248_v22 = vpop.xlane.xlu1 %247 }
  0xd0   : > { %v256_v23 = vmul.f32 0.00390625, %v248_v22 }
  0xd1   : > { %v270_v25 = vrot.slane %v254_v21, %v265_v17 }
  0xd2   : > { %v278_v27 = vrot.slane %v256_v23, %v265_v17 }
  0xd3   : > { %v280_v28 = vsel %vm279_vm0, %v270_v25, %v266_v24  ;;  %vm423_vm0 = vcmask 1045504  }
  0xd4   : > { %v282_v29 = vsel %vm281_vm1, %v274_v26, %v280_v28  ;;  %vm419_vm1 = vcmask 48128  }
  0xd5   : > { %v284_v30 = vsel %vm283_vm2, %v278_v27, %v282_v29 }
  0xd6   : > { %287 = vrot.lane.b32.xlu0 %v284_v30, %s887_s24  ;;  %v313_v49 = vsel %vm311_vm12, %v284_v30, 0.0 }
 0x148   : > { %v288_v31 = vpop.permute.xlu0 %287 }
 0x149   : > { %v289_v32 = vsel %vm286_vm3, %v288_v31, %v284_v30 }
 0x14a   : > { %290 = vrot.lane.b32.xlu1 %v289_v32, %s887_s24  ;;  %s895_s24 = smov [#allocation6]  }
 0x1bc   : > { %v291_v34 = vpop.permute.xlu1 %290 }
 0x1bd   : > { %v292_v36 = vsel %vm286_vm3, %v291_v34, %v284_v30 }
 0x1be   : > { %298 = vrot.lane.b32.xlu0 %v292_v36, %s890_s6  ;;  %306 = vrot.lane.b32.xlu1 %v292_v36, %s891_s8  ;;  %s804_s6 = sshll.u32 %s895_s24, 4  ;;  %s805_s6 = int_to_ptr.vmem [resolvable:$false] %s804_s6 }
 0x1bf   : > { %s806_s8 = scalar_lea.vmem %s805_s6, 2048  ;;  %p807_p6 = scmp.lt.s32.totalorder %s1092_s4, %s805_s6 }
 0x1c0   : > { %p808_p13 = scmp.lt.s32.totalorder %s806_s8, %s800_s21 }
 0x1c2   : > { %318 = vrot.lane.b32.xlu1 %v292_v36, %s893_s9  ;;  %p809_p2 = por %p808_p13, %p807_p6 }
 0x1c4   : > { %p810_p5 = pnand %p809_p2, %p803_p0 }
 0x1c6   : > { %326 = vrot.lane.b32.xlu1 %v292_v36, %s894_s10 }
 0x230   : > { %v307_v40 = vpop.permute.xlu1 %306  ;;  %v299_v42 = vpop.permute.xlu0 %298 }
 0x231   : > { %v309_v41 = vsel %vm305_vm7, %v307_v40, 0.0  ;;  %v301_v47 = vsel %vm296_vm11, %v299_v42, 0.0 }
 0x232   : > { %v331_v43 = vrot.slane %v309_v41, 4 }
 0x234   : > { %v319_v44 = vpop.permute.xlu1 %318  ;;  %v337_v50 = vsel %vm336_vm13, %v301_v47, %v331_v43 }
 0x235   : > { %v321_v45 = vsel %vm316_vm10, %v319_v44, 0.0 }
 0x236   : > { %v334_v46 = vrot.slane %v321_v45, 4 }
 0x238   : > { %v338_v51 = vsel %vm336_vm13, %v313_v49, %v334_v46  ;;  %v327_v53 = vpop.permute.xlu1 %326 }
 0x239   : > { %v690_v52 = vpack.c.bf16 %v338_v51, %v337_v50  ;;  %v329_v55 = vsel %vm324_vm14, %v327_v53, 0.0 }
 0x23b   : > { %691 = vmatpush3.bf16.msra.mxu0 %v690_v52 }
 0x23c   : > { %679 = vmatprep.subr.mxu0 %v889_v35 }
 0x23f   : > { %680 = vmatpush3.msk.msra.mxu0 %vm336_vm13, %v329_v55 }
 0x240   : > { %682 = vmatmul.mubr.msk.f32.vlgmr.msra.gmra.mrb[0].mxu0 %vm340_vm15, %v339_v54 }
 0x313   : > { %v413_v56 = vpop.f32.mrb[0].mxu0 }
 0x314   : > { %v418_v57 = vmax.f32 %v413_v56, 0.0  ;;  %v683_v58 = vpop.f32.mrb[1].mxu0 }
 0x316   : > { %685 = vmatpush3.msk.msra.mxu1 %vm423_vm0, %v418_v57 }
 0x317   : > { %687 = vmatmul.mubr.msk.f32.vlgmr.msra.gmra.mrb[0].mxu1 %vm419_vm1, %v417_v59 }
 0x3ea   : > { %v493_v60 = vpop.f32.mrb[0].mxu1 }
 0x3eb   : > { %v661_v61 = vmul.f32 -1.442695, %v493_v60  ;;  %v688_v62 = vpop.f32.mrb[1].mxu1 }
 0x3ed   : > { %766 = vpow2.f32 %v661_v61 }
 0x3f7   : > { %v767_v63 = vpop.eup %766 }
 0x3f8   : > { %v500_v3 = vadd.f32 1.0, %v767_v63 }
 0x3fa   : > { %768 = vrcp.f32 %v500_v3 }
 0x404   : > { %v769_v11 = vpop.eup %768 }
 0x405   : > { %v513_v12 = vrot.slane %v769_v11, %v512_v7  ;;  %v506_v13 = vrot.slane %v769_v11, %v505_v10  ;;  %v527_v17 = vrot.slane %v769_v11, %v526_v15  ;;  %v520_v18 = vrot.slane %v769_v11, %v519_v16 }
 0x407   : > { %515 = vbcast.lane.b32.xlu1 %v513_v12, 256  ;;  %508 = vbcast.lane.b32.xlu0 %v506_v13, 256 }
 0x40b   : > { %529 = vbcast.lane.b32.xlu1 %v527_v17, 256  ;;  %522 = vbcast.lane.b32.xlu0 %v520_v18, 256 }
 0x479   : > { %v516_v19 = vpop.permute.xlu1 %515  ;;  %v509_v20 = vpop.permute.xlu0 %508 }
 0x47a   : > { %v533_v21 = vmul.f32 %v516_v19, %v1050_v5  ;;  %v534_v22 = vmul.f32 %v516_v19, %v1052_v6  ;;  %v531_v23 = vmul.f32 %v509_v20, %v1040_v0  ;;  %v532_v24 = vmul.f32 %v509_v20, %v1042_v1 }
 0x47c   : > { %541 = vst [vmem:[%s204_s30 + $0x10] sm:$0xff] %v533_v21  ;;  %542 = vst [vmem:[%s204_s30 + $0x18] sm:$0xff] %v534_v22 }
 0x47d   : > { %539 = vst [vmem:[%s204_s30] sm:$0xff] %v531_v23  ;;  %540 = vst [vmem:[%s204_s30 + $0x8] sm:$0xff] %v532_v24  ;;  %v530_v14 = vpop.permute.xlu1 %529  ;;  %v523_v25 = vpop.permute.xlu0 %522 }
 0x47e   : > { %v537_v0 = vmul.f32 %v530_v14, %v1056_v8  ;;  %v538_v1 = vmul.f32 %v530_v14, %v1058_v9  ;;  %v535_v5 = vmul.f32 %v523_v25, %v1044_v2  ;;  %v536_v6 = vmul.f32 %v523_v25, %v1048_v4 }
 0x480   : > { %545 = vst [vmem:[%s204_s30 + $0x30] sm:$0xff] %v537_v0  ;;  %546 = vst [vmem:[%s204_s30 + $0x38] sm:$0xff] %v538_v1 }
 0x481   : > { %543 = vst [vmem:[%s204_s30 + $0x20] sm:$0xff] %v535_v5  ;;  %544 = vst [vmem:[%s204_s30 + $0x28] sm:$0xff] %v536_v6 }
 0x482   : > { %813 = shalt.err (!%p810_p5)
}
 0x483   : > { %s814_s9 = scalar_lea.hbm %s1097_s19, 1024  ;;  %s818_s23 = scalar_lea.hbm %s1153_s3, 2048 }
 0x484   : > { %p815_p4 = scmp.ne.s32.totalorder %s1097_s19, %s814_s9  ;;  %p819_p12 = scmp.lt.u32.totalorder %s1097_s19, %s1153_s3 }
 0x485   : > { %p820_p1 = scmp.lt.u32.totalorder %s818_s23, %s814_s9  ;;  %p822_p8 = scmp.lt.u32.totalorder %s814_s9, %s1097_s19 }
 0x486   : > { %p816_p7 = pnand %p815_p4, %p1161_p9 }
 0x487   : > { %p821_p3 = por %p820_p1, %p819_p12 }
 0x488   : > { %p817_p10 = pneg %p816_p7 }
 0x489   : > { %p823_p11 = por %p822_p8, %p821_p3 }
 0x48b   : > { %p824_p0 = pnand %p823_p11, %p817_p10 }
 0x48d   : > { %827 = shalt.err (!%p824_p0)
}
 0x48e   : > { %s896_s30 = smov 256   ;;  %s897_s5 = smov 16  }
 0x48f   : > { %694 = dma.vmem_to_hbm [thread:$0]  (%p1161_p9), %s1092_s4, 1024, %s1097_s19, %s548_s15, %s896_s30, %s896_s30, %s897_s5  }
 0x490 PF: > { %s576_s7 = sand.u32 1, %s862_s12   ;;  %p1162_p6 = scmp.ne.s32.totalorder %s1158_s27, 0 }
 0x491   : > { %p1163_p13 = scmp.ge.s32.totalorder %s882_s17, 2  ;;  %s577_s18 = scalar_lea.sflag [#allocation5], %s576_s7 }
 0x493   : > { %p701_p2 = pnand %p1163_p13, %p1162_p6 }
 0x495   : > { %857 = dma.done.wait (!%p701_p2), %s577_s18, 1024  }
 0x496   : > { %859 = vsyncadd (!%p701_p2), %s577_s18, 4294966272  ;;  %s19_s17 = sadd.s32 1, %s882_s17   ;;  %s1164_s12 = smov %s866_s13 }
 0x497   : > { %p16_p5 = scmp.ge.s32.totalorder %s19_s17, 4   ;;  %s1165_s13 = smov %s870_s14 }
 0x498   : > { %s1166_s14 = smov %s974_s26  ;;  %s1167_s15 = smov %s878_s16 }
 0x499   : > { %s1168_s16 = smov %s1170_s20  ;;  %18 = sbr.rel (!%p16_p5) target bundleno = 6 (0x6), region = 82 }
 0x4a0   :  { %582 = vsyncpa [#allocation4], 1 }
 0x4a1   :  { %584 = vsyncpa [#allocation4 + $0x1], 1 }
 0x4a2   :  { %585 = vsyncpa [#allocation5], 1 }
 0x4a3   :  { %587 = vsyncpa [#allocation5 + $0x1], 1 }

</bundles_post_ra>
